<compile_context>
chip_gen: v5e
topology: v5e:2x2
jax: 0.10.0
libtpu: 0.0.40
codegen_flags: <defaults>
</compile_context>

<pallas_src>
import functools

import jax
import jax.numpy as jnp
from jax.experimental import pallas as pl
from jax.experimental.pallas import tpu as pltpu


def _round_up(v, m):
    return ((v + m - 1) // m) * m


def _pick_tile(dim_padded, target, granule):
    """Largest multiple of `granule` that divides `dim_padded` and is <= target.
    `dim_padded` must itself be a multiple of `granule`, so this always succeeds
    (worst case: `granule`) — no oversized-fallback tiles on awkward shapes."""
    best = granule
    t = granule
    hi = min(max(target, granule), dim_padded)
    while t <= hi:
        if dim_padded % t == 0:
            best = t
        t += granule
    return best


def _vmem_budget_bytes():
    """Generation-aware scoped-VMEM budget: ~75% of physical per-core VMEM
    (96 MiB on v5e/v6e's 128 MiB, 48 MiB on v7x's 64 MiB per TensorCore)."""
    try:
        cap = int(getattr(pltpu.get_tpu_info(), "vmem_capacity_bytes", 0))
    except Exception:
        cap = 0
    if cap <= 0:
        cap = 64 * 1024 * 1024  # conservative fallback = v7x per-TC VMEM
    return (cap * 3) // 4


def _detect_num_cores():
    """Best-effort TensorCore count (2 on v7x).  Perf heuristic only."""
    try:
        return max(1, int(getattr(jax.devices()[0], "num_cores", 1) or 1))
    except Exception:
        return 1


def net2_kernel(x_ref, wt_ref, b_ref, o_ref):
    """One (tm, tn) output tile, accumulated in place over the K grid axis.

    The f32 output block's index_map ignores k, so it stays resident in VMEM
    across the reduction and doubles as the accumulator: no scratch buffer, no
    zero-fill pass, and the fused bias is folded into the k == 0 write instead
    of a separate finalize read-modify-write.
    """
    k = pl.program_id(2)
    partial = jnp.dot(x_ref[...], wt_ref[...],
                      preferred_element_type=jnp.float32)

    @pl.when(k == 0)
    def _first():
        o_ref[...] = partial + b_ref[...]      # bias folded into the init write

    @pl.when(k != 0)
    def _accumulate():
        o_ref[...] += partial


def prepare_net2_params(weight, bias, another_bias, compute_dtype=jnp.bfloat16):
    """One-time parameter prep (NOT per forward call):
      * transpose weight (M, N) -> (N, M) so the kernel computes x @ W_t,
      * cast to the compute dtype (default bf16: full-rate MXU, half the DMA),
      * pad the reduction dim up to a multiple of 128 here (zero K-padding is
        exact) so the hot path never re-materializes the weight,
      * fold the two biases into a single (1, M) f32 row (one DMA stream).
    """
    wt = jnp.asarray(weight).T.astype(compute_dtype)            # (N, M)
    n, _ = wt.shape
    k_pad = (-n) % 128
    if k_pad:
        wt = jnp.pad(wt, ((0, k_pad), (0, 0)))
    fused_bias = (jnp.asarray(bias, jnp.float32)
                  + jnp.asarray(another_bias, jnp.float32)).reshape(1, -1)
    return wt, fused_bias


@functools.partial(
    jax.jit,
    static_argnames=("tm_target", "tn_target", "tk_target",
                     "weight_buffers", "num_cores"))
def net2_forward(x, wt, fused_bias, *,
                 tm_target=512, tn_target=1024, tk_target=512,
                 weight_buffers=2, num_cores=None):
    """x: (B, N); wt: (K >= N, M) possibly K-padded; fused_bias: (1, M) f32.
    Returns (B, M) float32 (PyTorch Linear output precision)."""
    B, N = x.shape
    K, M = wt.shape
    assert N <= K and fused_bias.shape == (1, M)

    # Pre-cast x to the weight/compute dtype ONCE at the boundary, not per tile.
    if x.dtype != wt.dtype:
        x = x.astype(wt.dtype)
    x_bytes = jnp.dtype(x.dtype).itemsize
    w_bytes = jnp.dtype(wt.dtype).itemsize

    # Layout granules: 2-byte dtypes pack 2 rows per sublane -> 16-row granule.
    m_gran = 16 if x_bytes == 2 else 8
    n_gran = 128
    k_gran = 128

    Bp = _round_up(B, m_gran)
    Mp = _round_up(M, n_gran)
    Kp = _round_up(K, k_gran)

    # Large tiles for arithmetic intensity; always exact divisors of padded dims.
    tm = _pick_tile(Bp, tm_target, m_gran)
    tn = _pick_tile(Mp, tn_target, n_gran)
    tk = _pick_tile(Kp, tk_target, k_gran)

    # Generation-aware VMEM fit (double-buffered x / weight, resident f32 out).
    budget = int(_vmem_budget_bytes() * 0.9)
    w_bufs = max(2, int(weight_buffers))

    def vmem_usage(_tm, _tn, _tk):
        return (2 * _tm * _tk * x_bytes          # x tiles (double-buffered)
                + w_bufs * _tk * _tn * w_bytes   # weight tiles
                + 2 * _tn * 4                    # fused bias (tiny)
                + 2 * _tm * _tn * 4)             # f32 output / accumulator tiles

    while vmem_usage(tm, tn, tk) > budget:
        if tn >= max(tm, tk) and tn > n_gran:
            tn = _pick_tile(Mp, tn // 2, n_gran)
        elif tm >= tk and tm > m_gran:
            tm = _pick_tile(Bp, tm // 2, m_gran)
        elif tk > k_gran:
            tk = _pick_tile(Kp, tk // 2, k_gran)
        else:
            break

    # Megacore (v7x: 2 TCs): make sure the "parallel" axes have >= 2 tiles to
    # shard, as long as the halves stay large.  Prefer splitting N (re-reads the
    # small x stream) over B (would re-read the big weight stream).
    cores = num_cores if num_cores is not None else _detect_num_cores()
    if cores >= 2 and (Bp // tm) * (Mp // tn) < 2:
        if tn // 2 >= 256:
            tn = _pick_tile(Mp, tn // 2, n_gran)
        elif tm // 2 >= 128:
            tm = _pick_tile(Bp, tm // 2, m_gran)

    grid = (Bp // tm, Mp // tn, Kp // tk)

    # Bounded zero padding (K-padding is numerically exact; padded B rows / M
    # columns are sliced off below).  With prepped params wt is usually exact.
    if (B, N) != (Bp, Kp):
        x = jnp.pad(x, ((0, Bp - B), (0, Kp - N)))
    if (K, M) != (Kp, Mp):
        wt = jnp.pad(wt, ((0, Kp - K), (0, Mp - M)))
    if M != Mp:
        fused_bias = jnp.pad(fused_bias, ((0, 0), (0, Mp - M)))

    w_spec_kwargs = {}
    if w_bufs > 2:  # optional deeper buffering for the weight HBM stream
        w_spec_kwargs["pipeline_mode"] = pl.Buffered(w_bufs)

    out = pl.pallas_call(
        net2_kernel,
        out_shape=jax.ShapeDtypeStruct((Bp, Mp), jnp.float32),
        grid_spec=pltpu.PrefetchScalarGridSpec(
            num_scalar_prefetch=0,
            grid=grid,
            in_specs=[
                pl.BlockSpec((tm, tk), lambda i, j, k: (i, k)),          # x
                pl.BlockSpec((tk, tn), lambda i, j, k: (k, j),
                             **w_spec_kwargs),                           # W^T
                pl.BlockSpec((1, tn), lambda i, j, k: (0, j)),           # bias
            ],
            out_specs=pl.BlockSpec((tm, tn), lambda i, j, k: (i, j)),
        ),
        compiler_params=pltpu.CompilerParams(
            # B/M tiles are independent -> shardable across v7x's 2 TCs;
            # K is the accumulation axis -> "arbitrary".
            dimension_semantics=("parallel", "parallel", "arbitrary"),
            vmem_limit_bytes=int(_vmem_budget_bytes()),
        ),
    )(x, wt, fused_bias)

    if (Bp, Mp) != (B, M):
        out = out[:B, :M]
    return out


if __name__ == "__main__":
    # Net2(N=32, M=128), batch=8 — small shapes consistent with the module.
    B, N, M = 8, 32, 128
    key = jax.random.PRNGKey(0)
    kx, kw, kb, kab = jax.random.split(key, 4)

    x = jax.random.normal(kx, (B, N), dtype=jnp.float32)
    # PyTorch parameter shapes: weight (M, N), bias (M,), another_bias (M,).
    weight = jax.random.normal(kw, (M, N), dtype=jnp.float32) * 0.05
    bias = jax.random.normal(kb, (M,), dtype=jnp.float32) * 0.05
    another_bias = jax.random.uniform(kab, (M,), dtype=jnp.float32)

    # Pure-JAX reference of the same math.
    ref = x @ weight.T + bias + another_bias

    # f32 path (matches the PyTorch f32 reference to tight tolerance).
    wt_f32, fb_f32 = prepare_net2_params(weight, bias, another_bias, jnp.float32)
    out_f32 = net2_forward(x, wt_f32, fb_f32)
    jax.block_until_ready(out_f32)
    assert out_f32.shape == (B, M)
    assert jnp.allclose(out_f32, ref, atol=1e-5, rtol=1e-5)

    # Default bf16-weight path (bf16 MXU operands, f32 accumulation, f32 bias).
    wt_bf16, fb_bf16 = prepare_net2_params(weight, bias, another_bias)
    out_bf16 = net2_forward(x, wt_bf16, fb_bf16)
    jax.block_until_ready(out_bf16)
    assert out_bf16.shape == (B, M)
    assert jnp.allclose(out_bf16, ref, atol=2e-2, rtol=2e-2)

    print("KERNEL_OK")
</pallas_src>

<mosaic_0001>
module attributes {stable_mosaic.version = 11 : i64} {
  func.func @net2_kernel(%arg0: i32, %arg1: i32, %arg2: i32, %arg3: memref<8x128xf32, #tpu.memory_space<vmem>>, %arg4: memref<128x128xf32, #tpu.memory_space<vmem>>, %arg5: memref<1x128xf32, #tpu.memory_space<vmem>>, %arg6: memref<8x128xf32, #tpu.memory_space<vmem>>) attributes {dimension_semantics = [#tpu.dimension_semantics<parallel>, #tpu.dimension_semantics<parallel>, #tpu.dimension_semantics<arbitrary>], iteration_bounds = array<i64: 1, 1, 1>, scalar_prefetch = 0 : i64, scratch_operands = 0 : i64, tpu.core_type = #tpu.core_type<tc>, window_params = [{transform_indices = @transform_0, window_bounds = array<i64: 8, 128>}, {transform_indices = @transform_1, window_bounds = array<i64: 128, 128>}, {transform_indices = @transform_2, window_bounds = array<i64: 1, 128>}, {transform_indices = @transform_3, window_bounds = array<i64: 8, 128>}]} {
    %c0 = arith.constant 0 : index
    %c0_0 = arith.constant 0 : index
    %0 = vector.load %arg3[%c0, %c0_0] : memref<8x128xf32, #tpu.memory_space<vmem>>, vector<8x128xf32>
    %c0_1 = arith.constant 0 : index
    %c0_2 = arith.constant 0 : index
    %1 = vector.load %arg4[%c0_1, %c0_2] : memref<128x128xf32, #tpu.memory_space<vmem>>, vector<128x128xf32>
    %cst = arith.constant dense<0.000000e+00> : vector<8x128xf32>
    %2 = tpu.matmul %0, %1, %cst {dimension_numbers = #tpu.dot_dimension_numbers<[1], [0], [0], [1], [0, 0, 1, 1], [], []>} : vector<8x128xf32>, vector<128x128xf32>, vector<8x128xf32> -> vector<8x128xf32>
    %c0_i32 = arith.constant 0 : i32
    %3 = arith.cmpi eq, %arg2, %c0_i32 : i32
    %4 = arith.extui %3 : i1 to i32
    %c0_i32_3 = arith.constant 0 : i32
    %5 = arith.cmpi ne, %4, %c0_i32_3 : i32
    scf.if %5 {
      %c0_6 = arith.constant 0 : index
      %c0_7 = arith.constant 0 : index
      %9 = vector.load %arg5[%c0_6, %c0_7] : memref<1x128xf32, #tpu.memory_space<vmem>>, vector<1x128xf32>
      %10 = vector.broadcast %9 : vector<1x128xf32> to vector<8x128xf32>
      %11 = arith.addf %2, %10 : vector<8x128xf32>
      %c0_8 = arith.constant 0 : index
      %c0_9 = arith.constant 0 : index
      %12 = vector.load %arg6[%c0_8, %c0_9] : memref<8x128xf32, #tpu.memory_space<vmem>>, vector<8x128xf32>
      tpu.vector_store %arg6[%c0_8, %c0_9], %11 {strides = array<i32>} : memref<8x128xf32, #tpu.memory_space<vmem>>, vector<8x128xf32>,
    } else {
    }
    %c0_i32_4 = arith.constant 0 : i32
    %6 = arith.cmpi ne, %arg2, %c0_i32_4 : i32
    %7 = arith.extui %6 : i1 to i32
    %c0_i32_5 = arith.constant 0 : i32
    %8 = arith.cmpi ne, %7, %c0_i32_5 : i32
    scf.if %8 {
      %c0_6 = arith.constant 0 : index
      %c0_7 = arith.constant 0 : index
      %9 = vector.load %arg6[%c0_6, %c0_7] : memref<8x128xf32, #tpu.memory_space<vmem>>, vector<8x128xf32>
      %10 = arith.addf %9, %2 : vector<8x128xf32>
      %c0_8 = arith.constant 0 : index
      %c0_9 = arith.constant 0 : index
      %11 = vector.load %arg6[%c0_8, %c0_9] : memref<8x128xf32, #tpu.memory_space<vmem>>, vector<8x128xf32>
      tpu.vector_store %arg6[%c0_8, %c0_9], %10 {strides = array<i32>} : memref<8x128xf32, #tpu.memory_space<vmem>>, vector<8x128xf32>,
    } else {
    }
    return
  }
  func.func @transform_0(%arg0: i32, %arg1: i32, %arg2: i32) -> (i32, i32) {
    %c0_i32 = arith.constant 0 : i32
    return %arg0, %arg2 : i32, i32
  }
  func.func @transform_1(%arg0: i32, %arg1: i32, %arg2: i32) -> (i32, i32) {
    %c0_i32 = arith.constant 0 : i32
    return %arg2, %arg1 : i32, i32
  }
  func.func @transform_2(%arg0: i32, %arg1: i32, %arg2: i32) -> (i32, i32) {
    %c0_i32 = arith.constant 0 : i32
    %c0_i32_0 = arith.constant 0 : i32
    return %c0_i32, %arg1 : i32, i32
  }
  func.func @transform_3(%arg0: i32, %arg1: i32, %arg2: i32) -> (i32, i32) {
    %c0_i32 = arith.constant 0 : i32
    return %arg0, %arg1 : i32, i32
  }
}

</mosaic_0001>

<bundles_post_ra>
// kernel: net2_forward.1
= control target key start
LH: loop header
LB: loop body
LE: loop exit
PB: predicated region body
PF: predicated region fallthrough
CT: control target
= control target key end

     0   :  { %8 = vsyncpa [#allocation3], 0  ;;  %s195_s0 = inlined_call_operand.vmem [shape: f32[8,128], index: 0, kind: input, shape index: {}]   ;;  %s196_s1 = inlined_call_operand.hbm [shape: f32[128,128], index: 1, kind: input, shape index: {}]   ;;  %s197_s2 = inlined_call_operand.vmem [shape: f32[1,128], index: 2, kind: input, shape index: {}]   ;;  %s198_s3 = inlined_call_operand.hbm [shape: f32[8,128], index: 3, kind: output, shape index: {}]  }
   0x1   :  { %9 = vsyncpa [#allocation4], 0  ;;  %s16_s14 = sshll.u32 %s196_s1, 4  ;;  %s159_s15 = smov [#allocation2]   ;;  %s17_s14 = int_to_ptr.hbm [resolvable:$true] %s16_s14 }
   0x2   :  { %s18_s16 = sshll.u32 %s159_s15, 4  ;;  %s160_s17 = smov 128   ;;  %s19_s16 = int_to_ptr.vmem [resolvable:$true] %s18_s16 }
   0x3   :  { %s161_s18 = smov 8  }
   0x4   :  { %24 = dma.hbm_to_vmem [thread:$0]  %s17_s14, 2048, %s19_s16, [#allocation3], %s160_s17, %s160_s17, %s161_s18  }
   0x5   :  { %155 = dma.done.wait [#allocation3], 2048  }
   0x6   :  { %156 = vsyncadd [#allocation3], 4294965248  ;;  %v47_v0 = vld [vmem:[#allocation2 + $0x78] sm:$0xff]  ;;  %v46_v1 = vld [vmem:[#allocation2 + $0x70] sm:$0xff]  ;;  %s162_s22 = smov [#allocation5]   ;;  %s92_s26 = sshll.u32 %s198_s3, 4  ;;  %s93_s26 = int_to_ptr.hbm [resolvable:$true] %s92_s26 }
   0x7   :  { %48 = vmatpush.msra.mxu0 %v47_v0  ;;  %v45_v2 = vld [vmem:[#allocation2 + $0x68] sm:$0xff]  ;;  %v44_v3 = vld [vmem:[#allocation2 + $0x60] sm:$0xff]  ;;  %v43_v4 = vld [vmem:[#allocation2 + $0x58] sm:$0xff]  ;;  %s90_s23 = sshll.u32 %s162_s22, 4  ;;  %s91_s23 = int_to_ptr.vmem [resolvable:$true] %s90_s23 }
   0x8   :  { %v42_v5 = vld [vmem:[#allocation2 + $0x50] sm:$0xff]  ;;  %v41_v6 = vld [vmem:[#allocation2 + $0x48] sm:$0xff]  ;;  %v40_v7 = vld [vmem:[#allocation2 + $0x40] sm:$0xff] }
   0x9   :  { %49 = vmatpush.msra.mxu0 %v46_v1  ;;  %v39_v8 = vld [vmem:[#allocation2 + $0x38] sm:$0xff]  ;;  %v38_v9 = vld [vmem:[#allocation2 + $0x30] sm:$0xff]  ;;  %v37_v10 = vld [vmem:[#allocation2 + $0x28] sm:$0xff] }
   0xa   :  { %v36_v11 = vld [vmem:[#allocation2 + $0x20] sm:$0xff]  ;;  %v35_v12 = vld [vmem:[#allocation2 + $0x18] sm:$0xff]  ;;  %v34_v13 = vld [vmem:[#allocation2 + $0x10] sm:$0xff] }
   0xb   :  { %50 = vmatpush.msra.mxu0 %v45_v2  ;;  %v33_v14 = vld [vmem:[#allocation2 + $0x8] sm:$0xff]  ;;  %v32_v15 = vld [vmem:[#allocation2] sm:$0xff] }
   0xc   :  { %v31_v16 = vld [vmem:[%s195_s0] sm:$0xff] }
   0xd   :  { %51 = vmatpush.msra.mxu0 %v44_v3  ;;  %v106_v17 = vld [vmem:[%s197_s2] ss:$0 sm:$0xff] }
   0xf   :  { %52 = vmatpush.msra.mxu0 %v43_v4 }
  0x11   :  { %53 = vmatpush.msra.mxu0 %v42_v5 }
  0x13   :  { %54 = vmatpush.msra.mxu0 %v41_v6 }
  0x15   :  { %55 = vmatpush.msra.mxu0 %v40_v7 }
  0x17   :  { %56 = vmatpush.msra.mxu0 %v39_v8 }
  0x19   :  { %57 = vmatpush.msra.mxu0 %v38_v9 }
  0x1b   :  { %58 = vmatpush.msra.mxu0 %v37_v10 }
  0x1d   :  { %59 = vmatpush.msra.mxu0 %v36_v11 }
  0x1f   :  { %60 = vmatpush.msra.mxu0 %v35_v12 }
  0x21   :  { %61 = vmatpush.msra.mxu0 %v34_v13 }
  0x23   :  { %62 = vmatpush.msra.mxu0 %v33_v14 }
  0x25   :  { %63 = vmatpush.msra.mxu0 %v32_v15 }
  0x26   :  { %64 = vmatmul.f32.vlgmr.msra.gmra.mxu0 %v31_v16 }
  0xa3   :  { %v65_v18 = vpop.f32.mrf.mxu0 }
  0xa4   :  { %v76_v19 = vadd.f32 %v106_v17, %v65_v18 }
  0xa6   :  { %77 = vst [vmem:[#allocation5] sm:$0xff] %v76_v19 }
  0xa7   :  { %95 = dma.vmem_to_hbm [thread:$0]  %s91_s23, 128, %s93_s26, [#allocation4]  }
  0xa8   :  { %157 = dma.done.wait [#allocation4], 128  }
  0xa9   :  { %158 = vsyncadd [#allocation4], 4294967168 }
  0xaa   :  { %100 = vsyncpa [#allocation3], 1 }
  0xab   :  { %101 = vsyncpa [#allocation4], 1 }

</bundles_post_ra>
